<compile_context>
chip_gen: v7x
topology: tpu7x:2x2x1
jax: 0.10.0
libtpu: 0.0.40
codegen_flags: <defaults>
</compile_context>

<pallas_src>
import jax
import jax.numpy as jnp
from jax.experimental import pallas as pl
from jax.experimental.pallas import tpu as pltpu


def _complex_multiply_kernel(amp_ref, phase_ref, real_ref, imag_ref):
    amp = amp_ref[...]
    phase = phase_ref[...]
    # cos/sin run on the EUP, the two multiplies on the VPU; neither is the
    # saturating slot -- this kernel is purely HBM-bandwidth bound.
    real_ref[...] = amp * jnp.cos(phase)
    imag_ref[...] = amp * jnp.sin(phase)


def complex_multiply(amplitude, phase):
    assert amplitude.shape == phase.shape, "amplitude/phase must match (elementwise op)"
    orig_shape = amplitude.shape
    dtype = amplitude.dtype
    total = int(amplitude.size)

    itemsize = jnp.dtype(dtype).itemsize
    # Sublane minimum for the second-to-last block dim (packing): f32->8, bf16->16, int8/fp8->32.
    min_rows = {4: 8, 2: 16, 1: 32}.get(itemsize, 8)

    # Pick the widest lane-dense last dim that divides the element count so we
    # avoid padding entirely and get wide, unmasked stores.
    lanes = None
    for cand in (1024, 512, 256, 128):
        if total % cand == 0:
            lanes = cand
            break

    amp_flat = jnp.ravel(amplitude)
    ph_flat = jnp.ravel(phase)
    padded = total
    if lanes is None:
        # Ragged size: fall back to 128 lanes and pad the (short) tail.
        lanes = 128
        padded = ((total + lanes - 1) // lanes) * lanes
        amp_flat = jnp.pad(amp_flat, (0, padded - total))
        ph_flat = jnp.pad(ph_flat, (0, padded - total))

    rows = padded // lanes

    # Target ~2 MiB per block. With 2 inputs + 2 outputs, double-buffered, the
    # resident footprint is ~8x the block (~16 MiB) -- safe even on v7x.
    max_block_bytes = 2 * 1024 * 1024
    tile_rows = max(min_rows, min(rows, max_block_bytes // (lanes * itemsize)))
    tile_rows = (tile_rows // min_rows) * min_rows

    if tile_rows >= rows:
        # Small input: one invocation, whole slab as a single block.
        tile_rows = rows
        grid = (1,)
    else:
        # Large input: tile over rows; pad only if the tail is ragged.
        rem = rows % tile_rows
        if rem:
            extra = (tile_rows - rem) * lanes
            amp_flat = jnp.pad(amp_flat, (0, extra))
            ph_flat = jnp.pad(ph_flat, (0, extra))
            padded += extra
            rows = padded // lanes
        grid = (rows // tile_rows,)

    amp2d = amp_flat.reshape(rows, lanes)
    ph2d = ph_flat.reshape(rows, lanes)

    block = pl.BlockSpec((tile_rows, lanes), lambda i: (i, 0))

    real2d, imag2d = pl.pallas_call(
        _complex_multiply_kernel,
        out_shape=(
            jax.ShapeDtypeStruct((rows, lanes), dtype),
            jax.ShapeDtypeStruct((rows, lanes), dtype),
        ),
        grid_spec=pltpu.PrefetchScalarGridSpec(
            num_scalar_prefetch=0,
            grid=grid,
            in_specs=[block, block],
            out_specs=[block, block],
        ),
        compiler_params=pltpu.CompilerParams(
            dimension_semantics=("parallel",),
            # Explicit cap keeps us inside the v7x 32 MiB scoped-VMEM default
            # while leaving plenty of headroom for the 2 MiB blocks used here.
            vmem_limit_bytes=32 * 1024 * 1024,
        ),
    )(amp2d, ph2d)

    if padded != total:
        real = real2d.reshape(-1)[:total].reshape(orig_shape)
        imag = imag2d.reshape(-1)[:total].reshape(orig_shape)
    else:
        real = real2d.reshape(orig_shape)
        imag = imag2d.reshape(orig_shape)
    return real, imag


if __name__ == "__main__":
    key = jax.random.PRNGKey(0)
    k_amp, k_phase = jax.random.split(key)

    # NCHW inputs, matching the PyTorch module's elementwise contract.
    shape = (2, 4, 16, 16)
    amplitude = jax.random.normal(k_amp, shape, dtype=jnp.float32)
    phase = jax.random.uniform(k_phase, shape, dtype=jnp.float32,
                               minval=-3.14159, maxval=3.14159)

    real, imag = complex_multiply(amplitude, phase)
    jax.block_until_ready((real, imag))

    # Reference check against plain JAX.
    real_ref = amplitude * jnp.cos(phase)
    imag_ref = amplitude * jnp.sin(phase)
    assert jnp.allclose(real, real_ref, atol=1e-5, rtol=1e-5)
    assert jnp.allclose(imag, imag_ref, atol=1e-5, rtol=1e-5)
    assert real.shape == shape and imag.shape == shape

    print("KERNEL_OK")
</pallas_src>

<mosaic_0001>
module attributes {stable_mosaic.version = 11 : i64} {
  func.func @_complex_multiply_kernel(%arg0: i32, %arg1: memref<2x1024xf32, #tpu.memory_space<vmem>>, %arg2: memref<2x1024xf32, #tpu.memory_space<vmem>>, %arg3: memref<2x1024xf32, #tpu.memory_space<vmem>>, %arg4: memref<2x1024xf32, #tpu.memory_space<vmem>>) attributes {dimension_semantics = [#tpu.dimension_semantics<parallel>], iteration_bounds = array<i64: 1>, scalar_prefetch = 0 : i64, scratch_operands = 0 : i64, tpu.core_type = #tpu.core_type<tc>, window_params = [{transform_indices = @transform_0, window_bounds = array<i64: 2, 1024>}, {transform_indices = @transform_1, window_bounds = array<i64: 2, 1024>}, {transform_indices = @transform_2, window_bounds = array<i64: 2, 1024>}, {transform_indices = @transform_3, window_bounds = array<i64: 2, 1024>}]} {
    %c0 = arith.constant 0 : index
    %c0_0 = arith.constant 0 : index
    %0 = vector.load %arg1[%c0, %c0_0] : memref<2x1024xf32, #tpu.memory_space<vmem>>, vector<2x1024xf32>
    %c0_1 = arith.constant 0 : index
    %c0_2 = arith.constant 0 : index
    %1 = vector.load %arg2[%c0_1, %c0_2] : memref<2x1024xf32, #tpu.memory_space<vmem>>, vector<2x1024xf32>
    %2 = math.cos %1 : vector<2x1024xf32>
    %3 = arith.mulf %0, %2 : vector<2x1024xf32>
    %c0_3 = arith.constant 0 : index
    %c0_4 = arith.constant 0 : index
    %4 = vector.load %arg3[%c0_3, %c0_4] : memref<2x1024xf32, #tpu.memory_space<vmem>>, vector<2x1024xf32>
    tpu.vector_store %arg3[%c0_3, %c0_4], %3 {strides = array<i32>} : memref<2x1024xf32, #tpu.memory_space<vmem>>, vector<2x1024xf32>,
    %5 = math.sin %1 : vector<2x1024xf32>
    %6 = arith.mulf %0, %5 : vector<2x1024xf32>
    %c0_5 = arith.constant 0 : index
    %c0_6 = arith.constant 0 : index
    %7 = vector.load %arg4[%c0_5, %c0_6] : memref<2x1024xf32, #tpu.memory_space<vmem>>, vector<2x1024xf32>
    tpu.vector_store %arg4[%c0_5, %c0_6], %6 {strides = array<i32>} : memref<2x1024xf32, #tpu.memory_space<vmem>>, vector<2x1024xf32>,
    return
  }
  func.func @transform_0(%arg0: i32) -> (i32, i32) {
    %c0_i32 = arith.constant 0 : i32
    %c0_i32_0 = arith.constant 0 : i32
    return %arg0, %c0_i32 : i32, i32
  }
  func.func @transform_1(%arg0: i32) -> (i32, i32) {
    %c0_i32 = arith.constant 0 : i32
    %c0_i32_0 = arith.constant 0 : i32
    return %arg0, %c0_i32 : i32, i32
  }
  func.func @transform_2(%arg0: i32) -> (i32, i32) {
    %c0_i32 = arith.constant 0 : i32
    %c0_i32_0 = arith.constant 0 : i32
    return %arg0, %c0_i32 : i32, i32
  }
  func.func @transform_3(%arg0: i32) -> (i32, i32) {
    %c0_i32 = arith.constant 0 : i32
    %c0_i32_0 = arith.constant 0 : i32
    return %arg0, %c0_i32 : i32, i32
  }
}

</mosaic_0001>

<bundles_post_ra>
// kernel: tpu_custom_call.1
= control target key start
LH: loop header
LB: loop body
LE: loop exit
PB: predicated region body
PF: predicated region fallthrough
CT: control target
= control target key end

     0   :  { %9 = vsyncpa [#allocation3], 0  ;;  %s781_s0 = inlined_call_operand.hbm [shape: f32[2,1024], index: 0, kind: input, shape index: {}]   ;;  %s782_s1 = inlined_call_operand.hbm [shape: f32[2,1024], index: 1, kind: input, shape index: {}]   ;;  %s783_s2 = inlined_call_operand.hbm [shape: f32[2,1024], index: 2, kind: output, shape index: {0}]   ;;  %s784_s3 = inlined_call_operand.hbm [shape: f32[2,1024], index: 3, kind: output, shape index: {1}]  }
   0x1   :  { %10 = vsyncpa [#allocation6], 0 }
   0x2   :  { %11 = vsyncpa [#allocation4], 0 }
   0x3   :  { %12 = vsyncpa [#allocation9], 0  ;;  %s633_s12 = smov [#allocation2]   ;;  %s634_s14 = smov [#allocation5]  }
   0x4   :  { %s19_s13 = sshll.u32 %s633_s12, 4  ;;  %s29_s15 = sshll.u32 %s634_s14, 4  ;;  %s20_s13 = int_to_ptr.vmem [resolvable:$true] %s19_s13  ;;  %s30_s15 = int_to_ptr.vmem [resolvable:$true] %s29_s15 }
   0x5   :  { %s537_s18 = scalar_lea.hbm %s781_s0, 256 }
   0x6   :  { %p538_p0 = scmp.ne.s32.totalorder %s781_s0, %s537_s18  ;;  %p541_p1 = scmp.lt.u32.totalorder %s537_s18, %s781_s0 }
   0x8   :  { %p543_p2 = pnand %p541_p1, %p538_p0 }
   0xa   :  { %546 = shalt.err (!%p543_p2)
}
   0xb   :  { %s547_s23 = scalar_lea.vmem %s20_s13, 256  ;;  %p552_p4 = scmp.lt.s32.totalorder %s20_s13, %s20_s13 }
   0xc   :  { %p548_p3 = scmp.ne.s32.totalorder %s20_s13, %s547_s23  ;;  %p553_p5 = scmp.lt.s32.totalorder %s547_s23, %s547_s23 }
   0xe   :  { %p554_p6 = por %p553_p5, %p552_p4 }
  0x10   :  { %p555_p7 = pnand %p554_p6, %p548_p3 }
  0x12   :  { %558 = shalt.err (!%p555_p7)
}
  0x13   :  { %22 = dma.hbm_to_vmem [thread:$0]  %s781_s0, 256, %s20_s13, [#allocation3]  }
  0x14   :  { %s559_s28 = scalar_lea.hbm %s782_s1, 256 }
  0x15   :  { %p560_p8 = scmp.ne.s32.totalorder %s782_s1, %s559_s28  ;;  %p563_p9 = scmp.lt.u32.totalorder %s559_s28, %s782_s1 }
  0x17   :  { %p565_p10 = pnand %p563_p9, %p560_p8 }
  0x19   :  { %568 = shalt.err (!%p565_p10)
}
  0x1a   :  { %s569_s6 = scalar_lea.vmem %s30_s15, 256  ;;  %p574_p12 = scmp.lt.s32.totalorder %s30_s15, %s30_s15 }
  0x1b   :  { %p570_p11 = scmp.ne.s32.totalorder %s30_s15, %s569_s6  ;;  %p575_p13 = scmp.lt.s32.totalorder %s569_s6, %s569_s6 }
  0x1d   :  { %p576_p0 = por %p575_p13, %p574_p12 }
  0x1f   :  { %p577_p1 = pnand %p576_p0, %p570_p11 }
  0x21   :  { %580 = shalt.err (!%p577_p1)
}
  0x22   :  { %32 = dma.hbm_to_vmem [thread:$0]  %s782_s1, 256, %s30_s15, [#allocation6]  }
  0x23   :  { %625 = dma.done.wait [#allocation3], 256  }
  0x24   :  { %626 = vsyncadd [#allocation3], 4294967040 }
  0x25   :  { %627 = dma.done.wait [#allocation6], 256  }
  0x26   :  { %628 = vsyncadd [#allocation6], 4294967040  ;;  %v687_v0 = vld [vmem:[#allocation5] sm:$0xff]  ;;  %v691_v3 = vld [vmem:[#allocation5 + $0x8] sm:$0xff]  ;;  %v635_v24 = vmov 683565275  }
  0x27   :  { %v43_v1 = vand.u32 2147483647, %v687_v0  ;;  %v46_v2 = vand.u32 2139095040, %v687_v0  ;;  %v146_v4 = vand.u32 2147483647, %v691_v3  ;;  %v149_v5 = vand.u32 2139095040, %v691_v3 }
  0x28   :  { %v636_v26 = vmov 2475754826   ;;  %v637_v28 = vmov 2131351028   ;;  %v638_v30 = vmov 2102212464  }
  0x29   :  { %v47_v6 = vshrl.u32 %v46_v2, 23  ;;  %v50_v7 = vand.u32 8388607, %v43_v1  ;;  %v150_v8 = vshrl.u32 %v149_v5, 23  ;;  %v153_v9 = vand.u32 8388607, %v146_v4 }
  0x2a   :  { %v639_v32 = vmov 920167782   ;;  %v640_v40 = vmov 1326507024   ;;  %vm45_vm14 = vcmp.lt.s32.totalorder %v687_v0, 0  ;;  %s641_s1 = smov [#allocation7]  }
  0x2b   :  { %v495_v10 = vadd.s32 4294967169, %v47_v6  ;;  %v499_v11 = vadd.s32 4294967169, %v150_v8  ;;  %v51_v13 = vor.u32 8388608, %v50_v7  ;;  %v154_v14 = vor.u32 8388608, %v153_v9  ;;  %s471_s8 = sshll.u32 %s641_s1, 4  ;;  %s642_s9 = smov [#allocation8]   ;;  %s472_s8 = int_to_ptr.vmem [resolvable:$true] %s471_s8 }
  0x2c   :  { %vm44_vm15 = vcmp.le.f32.partialorder %v43_v1, 0.7853982  ;;  %s481_s10 = sshll.u32 %s642_s9, 4  ;;  %s581_s11 = scalar_lea.vmem %s472_s8, 256  ;;  %s482_s10 = int_to_ptr.vmem [resolvable:$true] %s481_s10 }
  0x2d   :  { %v53_v12 = vadd.s32 1, %v495_v10  ;;  %v156_v15 = vadd.s32 1, %v499_v11  ;;  %v699_v20 = vshll.u32 %v51_v13, 8  ;;  %v701_v22 = vshll.u32 %v154_v14, 8  ;;  %p582_p2 = scmp.ne.s32.totalorder %s472_s8, %s581_s11  ;;  %p586_p3 = scmp.lt.s32.totalorder %s472_s8, %s472_s8 }
  0x2e   :  { %p587_p4 = scmp.lt.s32.totalorder %s581_s11, %s581_s11 }
  0x2f   :  { %vm54_vm0 = vcmp.gt.s32.totalorder %v53_v12, 0  ;;  %vm157_vm1 = vcmp.gt.s32.totalorder %v156_v15, 0 }
  0x30   :  { %v55_v16 = vsel %vm54_vm0, %v53_v12, 0  ;;  %v158_v19 = vsel %vm157_vm1, %v156_v15, 0  ;;  %vm148_vm0 = vcmp.lt.s32.totalorder %v691_v3, 0  ;;  %vm147_vm1 = vcmp.le.f32.partialorder %v146_v4, 0.7853982  ;;  %p588_p5 = por %p587_p4, %p586_p3 }
  0x31   :  { %v56_v17 = vshrl.u32 %v55_v16, 5  ;;  %v57_v18 = vand.u32 31, %v55_v16  ;;  %v160_v21 = vand.u32 31, %v158_v19  ;;  %v703_v34 = vshrl.u32 %v158_v19, 5 }
  0x32   :  { %p589_p6 = pnand %p588_p5, %p582_p2 }
  0x33   :  { %v58_v23 = vsub.s32 32, %v57_v18  ;;  %v60_v25 = vshll.u32 %v635_v24, %v57_v18  ;;  %v63_v27 = vshll.u32 %v636_v26, %v57_v18  ;;  %v66_v29 = vshll.u32 %v637_v28, %v57_v18 }
  0x34   :  { %v69_v31 = vshll.u32 %v638_v30, %v57_v18  ;;  %v72_v33 = vshll.u32 %v639_v32, %v57_v18  ;;  %vm75_vm2 = vcmp.lt.s32.totalorder %v56_v17, 1  ;;  %vm76_vm3 = vcmp.lt.s32.totalorder %v56_v17, 2 }
  0x35   :  { %v59_v35 = vshrl.u32 %v635_v24, %v58_v23  ;;  %v61_v36 = vshrl.u32 %v636_v26, %v58_v23  ;;  %v64_v37 = vshrl.u32 %v637_v28, %v58_v23  ;;  %v67_v38 = vshrl.u32 %v638_v30, %v58_v23 }
  0x36   :  { %v70_v39 = vshrl.u32 %v639_v32, %v58_v23  ;;  %v73_v41 = vshrl.u32 %v640_v40, %v58_v23  ;;  %vm78_vm4 = vcmp.lt.s32.totalorder %v56_v17, 4  ;;  %v161_v45 = vsub.s32 32, %v160_v21 }
  0x37   :  { %v62_v42 = vor.u32 %v61_v36, %v60_v25  ;;  %v65_v43 = vor.u32 %v64_v37, %v63_v27  ;;  %v68_v44 = vor.u32 %v67_v38, %v66_v29  ;;  %vm77_vm5 = vcmp.lt.s32.totalorder %v56_v17, 3 }
  0x38   :  { %v71_v46 = vor.u32 %v70_v39, %v69_v31  ;;  %v74_v47 = vor.u32 %v73_v41, %v72_v33  ;;  %v163_v48 = vshll.u32 %v635_v24, %v160_v21  ;;  %v166_v56 = vshll.u32 %v636_v26, %v160_v21 }
  0x39   :  { %v79_v49 = vsel %vm75_vm2, %v59_v35, %v62_v42  ;;  %v80_v50 = vsel %vm78_vm4, %v68_v44, 2102212464  ;;  %v83_v51 = vsel %vm75_vm2, %v62_v42, %v65_v43  ;;  %v87_v52 = vsel %vm75_vm2, %v65_v43, %v68_v44 }
  0x3a   :  { %v81_v53 = vsel %vm77_vm5, %v65_v43, %v80_v50  ;;  %v84_v54 = vsel %vm78_vm4, %v71_v46, 920167782  ;;  %v88_v55 = vsel %vm78_vm4, %v74_v47, 1326507024  ;;  %v162_v59 = vshrl.u32 %v635_v24, %v161_v45 }
  0x3b   :  { %v85_v57 = vsel %vm77_vm5, %v68_v44, %v84_v54  ;;  %v89_v58 = vsel %vm77_vm5, %v71_v46, %v88_v55  ;;  %v164_v60 = vshrl.u32 %v636_v26, %v161_v45  ;;  %v82_v61 = vsel %vm76_vm3, %v79_v49, %v81_v53 }
  0x3c   :  { %v86_v62 = vsel %vm76_vm3, %v83_v51, %v85_v57  ;;  %v90_v63 = vsel %vm76_vm3, %v87_v52, %v89_v58  ;;  %v167_v2 = vshrl.u32 %v637_v28, %v161_v45  ;;  %v169_v11 = vshll.u32 %v637_v28, %v160_v21 }
  0x3d   :  { %v712_v5 = vmul.u32.u64.low %v699_v20, %v90_v63  ;;  %v713_v6 = vmul.u32.u64.high %v699_v20, %v90_v63, %v712_v5  ;;  %v716_v7 = vmul.u32.u64.low %v699_v20, %v86_v62  ;;  %v717_v8 = vmul.u32.u64.high %v699_v20, %v86_v62, %v716_v7 }
  0x3e   :  { %v165_v9 = vor.u32 %v164_v60, %v163_v48  ;;  %v168_v10 = vor.u32 %v167_v2, %v166_v56  ;;  %v170_v12 = vshrl.u32 %v638_v30, %v161_v45  ;;  %v172_v13 = vshll.u32 %v638_v30, %v160_v21 }
  0x3f   :  { %v173_v14 = vshrl.u32 %v639_v32, %v161_v45  ;;  %v175_v15 = vshll.u32 %v639_v32, %v160_v21  ;;  %v176_v16 = vshrl.u32 %v640_v40, %v161_v45  ;;  %v98_v17 = vmul.u32 %v699_v20, %v82_v61 }
  0x40   :  { %v171_v18 = vor.u32 %v170_v12, %v169_v11  ;;  %vm178_vm6 = vcmp.lt.s32.totalorder %v703_v34, 1  ;;  %vm179_vm7 = vcmp.lt.s32.totalorder %v703_v34, 2  ;;  %vm100_vm8 = vc.u32 %v713_v6, %v716_v7 }
  0x41   :  { %v101_v19 = vadd.s32 1, %v717_v8  ;;  %v174_v23 = vor.u32 %v173_v14, %v172_v13  ;;  %vm180_vm9 = vcmp.lt.s32.totalorder %v703_v34, 3  ;;  %v177_v24 = vor.u32 %v176_v16, %v175_v15 }
  0x42   :  { %vm181_vm10 = vcmp.lt.s32.totalorder %v703_v34, 4  ;;  %v182_v25 = vsel %vm178_vm6, %v162_v59, %v165_v9  ;;  %v186_v21 = vsel %vm178_vm6, %v165_v9, %v168_v10  ;;  %v190_v28 = vsel %vm178_vm6, %v168_v10, %v171_v18 }
  0x43   :  { %v102_v26 = vsel %vm100_vm8, %v101_v19, %v717_v8  ;;  %v183_v20 = vsel %vm181_vm10, %v171_v18, 2102212464  ;;  %v187_v27 = vsel %vm181_vm10, %v174_v23, 920167782  ;;  %v191_v32 = vsel %vm181_vm10, %v177_v24, 1326507024 }
  0x44   :  { %v103_v29 = vadd.s32 %v102_v26, %v98_v17  ;;  %v184_v30 = vsel %vm180_vm9, %v168_v10, %v183_v20  ;;  %v188_v31 = vsel %vm180_vm9, %v171_v18, %v187_v27  ;;  %v192_v36 = vsel %vm180_vm9, %v174_v23, %v191_v32 }
  0x45   :  { %v185_v33 = vsel %vm179_vm7, %v182_v25, %v184_v30  ;;  %v189_v35 = vsel %vm179_vm7, %v186_v21, %v188_v31  ;;  %v193_v38 = vsel %vm179_vm7, %v190_v28, %v192_v36  ;;  %v99_v57 = vadd.s32 %v716_v7, %v713_v6 }
  0x46   :  { %v104_v37 = vadd.s32 536870912, %v103_v29  ;;  %v734_v39 = vmul.u32.u64.low %v701_v22, %v189_v35  ;;  %v735_v40 = vmul.u32.u64.high %v701_v22, %v189_v35, %v734_v39  ;;  %v201_v44 = vmul.u32 %v701_v22, %v185_v33 }
  0x47   :  { %v738_v41 = vmul.u32.u64.low %v701_v22, %v193_v38  ;;  %v739_v42 = vmul.u32.u64.high %v701_v22, %v193_v38, %v738_v41  ;;  %vm135_vm8 = vweird.f32 %v687_v0 }
  0x48   :  { %v105_v43 = vshrl.u32 %v104_v37, 30  ;;  %v204_v46 = vadd.s32 1, %v735_v40 }
  0x49   :  { %vm203_vm11 = vc.u32 %v739_v42, %v734_v39  ;;  %v202_v13 = vadd.s32 %v734_v39, %v739_v42 }
  0x4a   :  { %v106_v45 = vshll.u32 %v105_v43, 30  ;;  %v205_v34 = vsel %vm203_vm11, %v204_v46, %v735_v40  ;;  %v129_v6 = vsub.s32 4, %v105_v43 }
  0x4b   :  { %v206_v48 = vadd.s32 %v205_v34, %v201_v44  ;;  %v39_v34 = vld [vmem:[#allocation2] sm:$0xff] }
  0x4c   :  { %v107_v47 = vsub.s32 %v103_v29, %v106_v45  ;;  %v130_v25 = vsel %vm45_vm14, %v129_v6, %v105_v43 }
  0x4d   :  { %v207_v50 = vadd.s32 536870912, %v206_v48  ;;  %v132_v28 = vsel %vm44_vm15, 0, %v130_v25 }
  0x4e   :  { %v109_v49 = vsub.s32 0, %v107_v47  ;;  %v346_v33 = vadd.s32 3, %v132_v28  ;;  %v136_v37 = vand.u32 3, %v132_v28 }
  0x4f   :  { %v208_v52 = vshrl.u32 %v207_v50, 30 }
  0x50   :  { %v496_v51 = vmin.u32 %v109_v49, %v107_v47  ;;  %v347_v38 = vand.u32 3, %v346_v33  ;;  %vm141_vm2 = vcmp.eq.s32.totalorder %v136_v37, 2  ;;  %vm138_vm4 = vcmp.eq.s32.totalorder %v136_v37, 0 }
  0x51   :  { %v209_v54 = vshll.u32 %v208_v52, 30  ;;  %v232_v32 = vsub.s32 4, %v208_v52  ;;  %vm137_vm6 = vcmp.lt.s32.totalorder %v136_v37, 2 }
  0x52   :  { %v111_v53 = vclz %v496_v51  ;;  %vm352_vm3 = vcmp.eq.s32.totalorder %v347_v38, 2  ;;  %vm349_vm5 = vcmp.eq.s32.totalorder %v347_v38, 0  ;;  %vm348_vm7 = vcmp.lt.s32.totalorder %v347_v38, 2 }
  0x53   :  { %v210_v56 = vsub.s32 %v206_v48, %v209_v54  ;;  %v233_v36 = vsel %vm148_vm0, %v232_v32, %v208_v52 }
  0x54   :  { %v497_v55 = vadd.s32 4294967294, %v111_v53  ;;  %v235_v41 = vsel %vm147_vm1, 0, %v233_v36 }
  0x55   :  { %v212_v58 = vsub.s32 0, %v210_v56  ;;  %v450_v45 = vadd.s32 3, %v235_v41  ;;  %v239_v51 = vand.u32 3, %v235_v41 }
  0x56   :  { %vm498_vm12 = vcmp.lt.s32.totalorder %v497_v55, 0 }
  0x57   :  { %v114_v22 = vsel %vm498_vm12, 0, %v497_v55  ;;  %v500_v62 = vmin.u32 %v212_v58, %v210_v56  ;;  %v451_v53 = vand.u32 3, %v450_v45  ;;  %vm244_vm9 = vcmp.eq.s32.totalorder %v239_v51, 2 }
  0x58   :  { %v115_v59 = vsub.s32 32, %v114_v22  ;;  %v116_v60 = vshll.u32 %v107_v47, %v114_v22  ;;  %v119_v61 = vsub.s32 4294967266, %v114_v22  ;;  %vm241_vm11 = vcmp.eq.s32.totalorder %v239_v51, 0 }
  0x59   :  { %v214_v5 = vclz %v500_v62  ;;  %vm456_vm10 = vcmp.eq.s32.totalorder %v451_v53, 2  ;;  %vm453_vm12 = vcmp.eq.s32.totalorder %v451_v53, 0  ;;  %v40_v62 = vld [vmem:[#allocation2 + $0x8] sm:$0xff] }
  0x5a   :  { %v117_v63 = vshrl.u32 %v99_v57, %v115_v59  ;;  %v120_v2 = vadd.s32 127, %v119_v61 }
  0x5b   :  { %v501_v10 = vadd.s32 4294967294, %v214_v5 }
  0x5c   :  { %v118_v8 = vor.u32 %v117_v63, %v116_v60  ;;  %v121_v9 = vshll.u32 %v120_v2, 23 }
  0x5d   :  { %vm502_vm13 = vcmp.lt.s32.totalorder %v501_v10, 0 }
  0x5e   :  { %v122_v11 = vor.u32 4788187, %v121_v9  ;;  %v125_v12 = vcvt.s32.f32 %v118_v8  ;;  %v217_v7 = vsel %vm502_vm13, 0, %v501_v10  ;;  %vm240_vm13 = vcmp.lt.s32.totalorder %v239_v51, 2 }
  0x5f   :  { %v218_v15 = vsub.s32 32, %v217_v7  ;;  %v219_v16 = vshll.u32 %v210_v56, %v217_v7  ;;  %v222_v17 = vsub.s32 4294967266, %v217_v7 }
  0x60   :  { %v123_v14 = vand.u32 2147483647, %v122_v11 }
  0x61   :  { %v220_v19 = vshrl.u32 %v202_v13, %v218_v15  ;;  %v223_v23 = vadd.s32 127, %v222_v17 }
  0x62   :  { %v126_v18 = vmul.f32 %v125_v12, %v123_v14 }
  0x63   :  { %v221_v21 = vor.u32 %v220_v19, %v219_v16  ;;  %v224_v26 = vshll.u32 %v223_v23, 23 }
  0x64   :  { %v127_v24 = vxor.u32 2147483648, %v126_v18 }
  0x65   :  { %v225_v29 = vor.u32 4788187, %v224_v26  ;;  %v228_v30 = vcvt.s32.f32 %v221_v21 }
  0x66   :  { %v128_v20 = vsel %vm45_vm14, %v127_v24, %v126_v18  ;;  %vm452_vm14 = vcmp.lt.s32.totalorder %v451_v53, 2 }
  0x67   :  { %v131_v27 = vsel %vm44_vm15, %v687_v0, %v128_v20  ;;  %v226_v31 = vand.u32 2147483647, %v225_v29  ;;  %vm238_vm15 = vweird.f32 %v691_v3 }
  0x68   :  { %529 = vcosq.f32 %v131_v27 }
  0x69   :  { %531 = vsinq.f32 %v131_v27  ;;  %v229_v35 = vmul.f32 %v228_v30, %v226_v31 }
  0x6b   :  { %v230_v1 = vxor.u32 2147483648, %v229_v35 }
  0x6d   :  { %v231_v39 = vsel %vm148_vm0, %v230_v1, %v229_v35 }
  0x6e   :  { %v234_v40 = vsel %vm147_vm1, %v691_v3, %v231_v39 }
  0x6f   :  { %533 = vcosq.f32 %v234_v40 }
  0x70   :  { %535 = vsinq.f32 %v234_v40 }
  0x72   :  { %v530_v42 = vpop.eup %529 }
  0x73   :  { %v532_v43 = vpop.eup %531  ;;  %v142_v44 = vxor.u32 2147483648, %v530_v42 }
  0x74   :  { %v139_v4 = vxor.u32 2147483648, %v532_v43 }
  0x75   :  { %v143_v46 = vsel %vm141_vm2, %v142_v44, %v532_v43  ;;  %v354_v47 = vsel %vm352_vm3, %v142_v44, %v532_v43 }
  0x76   :  { %v140_v48 = vsel %vm138_vm4, %v530_v42, %v139_v4  ;;  %v351_v49 = vsel %vm349_vm5, %v530_v42, %v139_v4 }
  0x77   :  { %v144_v50 = vsel %vm137_vm6, %v140_v48, %v143_v46  ;;  %v355_v52 = vsel %vm348_vm7, %v351_v49, %v354_v47 }
  0x78   :  { %v145_v54 = vsel %vm135_vm8, nan, %v144_v50  ;;  %v356_v55 = vsel %vm135_vm8, nan, %v355_v52 }
  0x79   :  { %v249_v56 = vmul.f32 %v145_v54, %v39_v34  ;;  %v461_v57 = vmul.f32 %v356_v55, %v39_v34  ;;  %v534_v22 = vpop.eup %533 }
  0x7a   :  { %v536_v58 = vpop.eup %535  ;;  %v245_v0 = vxor.u32 2147483648, %v534_v22 }
  0x7b   :  { %251 = vst [vmem:[#allocation7] sm:$0xff] %v249_v56  ;;  %463 = vst [vmem:[#allocation8] sm:$0xff] %v461_v57  ;;  %v242_v59 = vxor.u32 2147483648, %v536_v58 }
  0x7c   :  { %v246_v60 = vsel %vm244_vm9, %v245_v0, %v536_v58  ;;  %v458_v61 = vsel %vm456_vm10, %v245_v0, %v536_v58 }
  0x7d   :  { %v243_v63 = vsel %vm241_vm11, %v534_v22, %v242_v59  ;;  %v455_v2 = vsel %vm453_vm12, %v534_v22, %v242_v59 }
  0x7e   :  { %v247_v5 = vsel %vm240_vm13, %v243_v63, %v246_v60  ;;  %v459_v8 = vsel %vm452_vm14, %v455_v2, %v458_v61 }
  0x7f   :  { %v248_v9 = vsel %vm238_vm15, nan, %v247_v5  ;;  %v460_v10 = vsel %vm238_vm15, nan, %v459_v8 }
  0x80   :  { %v250_v11 = vmul.f32 %v248_v9, %v40_v62  ;;  %v462_v12 = vmul.f32 %v460_v10, %v40_v62 }
  0x82   :  { %252 = vst [vmem:[#allocation7 + $0x8] sm:$0xff] %v250_v11  ;;  %464 = vst [vmem:[#allocation8 + $0x8] sm:$0xff] %v462_v12 }
  0x83   :  { %592 = shalt.err (!%p589_p6)
}
  0x84   :  { %s593_s14 = scalar_lea.hbm %s783_s2, 256 }
  0x85   :  { %p594_p7 = scmp.ne.s32.totalorder %s783_s2, %s593_s14  ;;  %p597_p8 = scmp.lt.u32.totalorder %s593_s14, %s783_s2 }
  0x87   :  { %p599_p9 = pnand %p597_p8, %p594_p7 }
  0x89   :  { %602 = shalt.err (!%p599_p9)
}
  0x8a   :  { %474 = dma.vmem_to_hbm [thread:$0]  %s472_s8, 256, %s783_s2, [#allocation4]  }
  0x8b   :  { %s603_s21 = scalar_lea.vmem %s482_s10, 256  ;;  %p608_p11 = scmp.lt.s32.totalorder %s482_s10, %s482_s10 }
  0x8c   :  { %p604_p10 = scmp.ne.s32.totalorder %s482_s10, %s603_s21  ;;  %p609_p12 = scmp.lt.s32.totalorder %s603_s21, %s603_s21 }
  0x8e   :  { %p610_p13 = por %p609_p12, %p608_p11 }
  0x90   :  { %p611_p0 = pnand %p610_p13, %p604_p10 }
  0x92   :  { %614 = shalt.err (!%p611_p0)
}
  0x93   :  { %s615_s24 = scalar_lea.hbm %s784_s3, 256 }
  0x94   :  { %p616_p1 = scmp.ne.s32.totalorder %s784_s3, %s615_s24  ;;  %p619_p2 = scmp.lt.u32.totalorder %s615_s24, %s784_s3 }
  0x96   :  { %p621_p3 = pnand %p619_p2, %p616_p1 }
  0x98   :  { %624 = shalt.err (!%p621_p3)
}
  0x99   :  { %484 = dma.vmem_to_hbm [thread:$0]  %s482_s10, 256, %s784_s3, [#allocation9]  }
  0x9a   :  { %629 = dma.done.wait [#allocation4], 256  }
  0x9b   :  { %630 = vsyncadd [#allocation4], 4294967040 }
  0x9c   :  { %631 = dma.done.wait [#allocation9], 256  }
  0x9d   :  { %632 = vsyncadd [#allocation9], 4294967040 }
  0x9e   :  { %491 = vsyncpa [#allocation3], 1 }
  0x9f   :  { %492 = vsyncpa [#allocation6], 1 }
  0xa0   :  { %493 = vsyncpa [#allocation4], 1 }
  0xa1   :  { %494 = vsyncpa [#allocation9], 1 }

</bundles_post_ra>
